<compile_context>
chip_gen: v5e
topology: v5e:2x2
jax: 0.10.0
libtpu: 0.0.40
codegen_flags: <defaults>
</compile_context>

<pallas_src>
import functools

import jax
import jax.numpy as jnp
from jax import lax
from jax.experimental import pallas as pl
from jax.experimental.pallas import tpu as pltpu


def _channel_attention_kernel(x_ref, w1t_ref, w2t_ref, o_ref,
                              sum_acc, max_acc, *, hw_true, tail_len):
    """Grid: (batch tile b [parallel], HW tile s [arbitrary / reduction])."""
    s_idx = pl.program_id(1)
    last = pl.num_programs(1) - 1

    # ---- init per-batch-tile accumulators on the first HW tile --------------
    @pl.when(s_idx == 0)
    def _init():
        sum_acc[...] = jnp.zeros(sum_acc.shape, jnp.float32)
        max_acc[...] = jnp.full(max_acc.shape, -jnp.inf, jnp.float32)

    # ---- accumulate this HW tile: one small (Bn, C) RMW per grid step -------
    def _accumulate(x_for_sum, x_for_max):
        sum_acc[...] = sum_acc[...] + jnp.sum(x_for_sum, axis=-1,
                                              dtype=jnp.float32)
        max_acc[...] = jnp.maximum(
            max_acc[...], jnp.max(x_for_max, axis=-1).astype(jnp.float32))

    if tail_len:  # static: a ragged last HW tile exists
        @pl.when(s_idx != last)
        def _hot():                       # fast path: no masking at all
            x = x_ref[...]
            _accumulate(x, x)

        @pl.when(s_idx == last)
        def _tail():                      # cold path: mask only the padded lanes
            x = x_ref[...]
            lane = lax.broadcasted_iota(jnp.int32, (1, 1, x.shape[-1]), 2)
            valid = lane < tail_len
            _accumulate(jnp.where(valid, x, jnp.zeros((), x.dtype)),
                        jnp.where(valid, x, jnp.full((), -jnp.inf, x.dtype)))
    else:
        x = x_ref[...]
        _accumulate(x, x)

    # ---- finalize: tiny MLP + sigmoid, once per batch tile ------------------
    @pl.when(s_idx == last)
    def _finalize():
        p_avg = sum_acc[...] * (1.0 / hw_true)            # (Bn, C) f32
        p_max = max_acc[...]                              # (Bn, C) f32
        w1t = w1t_ref[...]                                # (C, Cr)
        w2t = w2t_ref[...]                                # (Cr, C)

        def mlp(v):
            h = jnp.maximum(
                jnp.dot(v, w1t, preferred_element_type=jnp.float32), 0.0)
            return jnp.dot(h, w2t, preferred_element_type=jnp.float32)

        z = mlp(p_avg) + mlp(p_max)                       # (Bn, C)
        # o_ref block is (1, Bn, C); adding a leading unit dim is layout-free.
        o_ref[...] = jax.nn.sigmoid(z).astype(o_ref.dtype)[None]


def channel_attention(x_nchw, w1, w2, *,
                      x_block_budget_bytes=8 * 1024 * 1024,
                      target_step_bytes=4 * 1024 * 1024):
    """
    x_nchw: (N, C, H, W)    f32 or bf16 (kept in its own dtype on the wire)
    w1:     (Cr, C)         fc1.weight[:, :, 0, 0],  Cr = C // ratio
    w2:     (C, Cr)         fc2.weight[:, :, 0, 0]
    returns (N, C, 1, 1), matching PyTorch ChannelAttention.forward.
    """
    N, C, H, W = x_nchw.shape
    Cr = w1.shape[0]
    hw = H * W
    dtype = x_nchw.dtype
    itemsize = jnp.dtype(dtype).itemsize

    # Free reshape (merges contiguous trailing dims) -- no pad, no extra HBM pass.
    x_flat = x_nchw.reshape(N, C, hw)

    # ---- batch tile: a divisor of N (no batch padding); capped at N//2 so the
    # "parallel" axis has >= 2 steps (v7x megacore) whenever N >= 2. ------------
    divisors = [d for d in range(1, N + 1) if N % d == 0]
    bn_cap = max(1, N // 2) if N >= 2 else 1
    bn_cands = [d for d in divisors if d <= bn_cap]

    per_buf = max(int(x_block_budget_bytes), 1)
    row_bytes = C * hw * itemsize

    if row_bytes <= per_buf:
        # Whole H*W row per block: last block dim == full array dim (always legal,
        # even when hw % 128 != 0), so no tail masking is needed at all.
        tile_hw = hw
        step_cap = min(per_buf, max(target_step_bytes, row_bytes))
        bn = max(d for d in bn_cands if d * row_bytes <= step_cap)
    else:
        # Tile H*W in 128-lane multiples; shrink Bn before letting the tile drop
        # below 512 lanes (keeps DMA runs long and the scratch small).
        def tile_for(d):
            return (per_buf // (d * C * itemsize)) // 128 * 128
        bn = max((d for d in bn_cands if tile_for(d) >= 512), default=1)
        tile_hw = max(128, tile_for(bn))

    n_b_tiles = N // bn
    n_hw_tiles = pl.cdiv(hw, tile_hw)
    tail = hw - (n_hw_tiles - 1) * tile_hw
    tail_len = 0 if tail == tile_hw else tail          # 0 => no tail masking

    # 1x1-conv weights, transposed for row-vector matmuls (tiny; resident, f32).
    w1t = jnp.transpose(w1).astype(jnp.float32)        # (C, Cr)
    w2t = jnp.transpose(w2).astype(jnp.float32)        # (Cr, C)

    # VMEM limit from actual footprint (+ f32-cast hedge for sub-32-bit inputs
    # and headroom).  Defaults keep this ~32-40 MiB, safe on v7x's 64 MiB VMEM;
    # raise x_block_budget_bytes on v5e/v6e (128 MiB VMEM) for bigger tiles.
    x_block_bytes = bn * C * tile_hw * itemsize
    vmem_need = (2 * x_block_bytes                      # double-buffered x
                 + bn * C * tile_hw * 4                 # possible f32 temp
                 + 2 * bn * C * itemsize                # output blocks
                 + 2 * (C * Cr + Cr * C) * 4            # resident weights
                 + 2 * bn * C * 4)                      # sum/max scratch
    vmem_limit = int(min(max(32 * 1024 * 1024, vmem_need + 4 * 1024 * 1024),
                         128 * 1024 * 1024))

    kernel = functools.partial(_channel_attention_kernel,
                               hw_true=hw, tail_len=tail_len)

    out = pl.pallas_call(
        kernel,
        out_shape=jax.ShapeDtypeStruct((n_b_tiles, bn, C), dtype),
        grid_spec=pltpu.PrefetchScalarGridSpec(
            num_scalar_prefetch=0,
            grid=(n_b_tiles, n_hw_tiles),      # batch parallel, HW reduction last
            in_specs=[
                pl.BlockSpec((bn, C, tile_hw), lambda b, s: (b, 0, s)),
                pl.BlockSpec((C, Cr), lambda b, s: (0, 0)),    # resident weights
                pl.BlockSpec((Cr, C), lambda b, s: (0, 0)),    # resident weights
            ],
            out_specs=pl.BlockSpec((1, bn, C), lambda b, s: (b, 0, 0)),
            scratch_shapes=[
                pltpu.VMEM((bn, C), jnp.float32),   # running sum
                pltpu.VMEM((bn, C), jnp.float32),   # running max
            ],
        ),
        compiler_params=pltpu.CompilerParams(
            dimension_semantics=("parallel", "arbitrary"),
            vmem_limit_bytes=vmem_limit,
        ),
    )(x_flat, w1t, w2t)

    # (n_b_tiles, bn, C) flattens in (n, c) order -> pure reshape, no transpose.
    return out.reshape(N, C, 1, 1)


def channel_attention_ref(x, w1, w2):
    # pure-JAX reference of the PyTorch forward
    xf = x.astype(jnp.float32)
    avg = jnp.mean(xf, axis=(2, 3))                 # (N, C)
    mx = jnp.max(xf, axis=(2, 3))                   # (N, C)

    w1f = w1.astype(jnp.float32)
    w2f = w2.astype(jnp.float32)

    def mlp(v):
        h = jnp.maximum(v @ w1f.T, 0.0)             # (N, Cr)
        return h @ w2f.T                            # (N, C)

    out = jax.nn.sigmoid(mlp(avg) + mlp(mx))
    return out.reshape(*out.shape, 1, 1).astype(x.dtype)


if __name__ == "__main__":
    key = jax.random.PRNGKey(0)

    def run_case(case_key, N, C, H, W, ratio, **kw):
        k_x, k_w1, k_w2 = jax.random.split(case_key, 3)
        Cr = max(1, C // ratio)
        x = jax.random.normal(k_x, (N, C, H, W), dtype=jnp.float32)
        w1 = jax.random.normal(k_w1, (Cr, C), dtype=jnp.float32) * 0.5
        w2 = jax.random.normal(k_w2, (C, Cr), dtype=jnp.float32) * 0.5

        out = channel_attention(x, w1, w2, **kw)
        out = jax.block_until_ready(out)
        ref = channel_attention_ref(x, w1, w2)

        assert out.shape == (N, C, 1, 1)
        err = jnp.max(jnp.abs(out.astype(jnp.float32) - ref.astype(jnp.float32)))
        assert jnp.allclose(out, ref, atol=1e-5, rtol=1e-5), (
            f"mismatch (N={N},C={C},H={H},W={W}): max_abs_err={err}")

    k1, k2, k3, k4 = jax.random.split(key, 4)
    # primary small case (batch=2, channels=4, 16x16 spatial): single full-HW tile
    run_case(k1, N=2, C=4, H=16, W=16, ratio=1)
    # forced multi-HW-tile path with a ragged (masked) tail tile
    run_case(k2, N=3, C=8, H=17, W=19, ratio=2, x_block_budget_bytes=4096)
    # forced multi-HW-tile path, tail-free (unmasked fast path only), 4 batch tiles
    run_case(k3, N=4, C=8, H=16, W=16, ratio=2, x_block_budget_bytes=4096)
    # Bn>1 batch tiling with a full-HW block whose length is not a multiple of 128
    run_case(k4, N=10, C=8, H=9, W=9, ratio=2)

    print("KERNEL_OK")
</pallas_src>

<mosaic_0001>
module attributes {stable_mosaic.version = 11 : i64} {
  func.func @_channel_attention_kernel(%arg0: i32, %arg1: i32, %arg2: memref<1x4x256xf32, #tpu.memory_space<vmem>>, %arg3: memref<4x4xf32, #tpu.memory_space<vmem>>, %arg4: memref<4x4xf32, #tpu.memory_space<vmem>>, %arg5: memref<1x1x4xf32, #tpu.memory_space<vmem>>, %arg6: memref<1x4xf32, #tpu.memory_space<vmem>>, %arg7: memref<1x4xf32, #tpu.memory_space<vmem>>) attributes {dimension_semantics = [#tpu.dimension_semantics<parallel>, #tpu.dimension_semantics<arbitrary>], iteration_bounds = array<i64: 2, 1>, scalar_prefetch = 0 : i64, scratch_operands = 2 : i64, tpu.core_type = #tpu.core_type<tc>, window_params = [{transform_indices = @transform_0, window_bounds = array<i64: 1, 4, 256>}, {pipeline_mode = #tpu.pipeline_mode<synchronous>, transform_indices = @transform_1, window_bounds = array<i64: 4, 4>}, {pipeline_mode = #tpu.pipeline_mode<synchronous>, transform_indices = @transform_2, window_bounds = array<i64: 4, 4>}, {transform_indices = @transform_3, window_bounds = array<i64: 1, 1, 4>}]} {
    %c0_i32 = arith.constant 0 : i32
    %0 = arith.cmpi eq, %arg1, %c0_i32 : i32
    %1 = arith.extui %0 : i1 to i32
    %c0_i32_0 = arith.constant 0 : i32
    %2 = arith.cmpi ne, %1, %c0_i32_0 : i32
    scf.if %2 {
      %cst_14 = arith.constant 0.000000e+00 : f32
      %15 = vector.broadcast %cst_14 : f32 to vector<1x4xf32>
      %c0_15 = arith.constant 0 : index
      %c0_16 = arith.constant 0 : index
      %16 = vector.load %arg6[%c0_15, %c0_16] : memref<1x4xf32, #tpu.memory_space<vmem>>, vector<1x4xf32>
      tpu.vector_store %arg6[%c0_15, %c0_16], %15 {strides = array<i32>} : memref<1x4xf32, #tpu.memory_space<vmem>>, vector<1x4xf32>,
      %cst_17 = arith.constant 0xFF800000 : f32
      %17 = vector.broadcast %cst_17 : f32 to vector<1x4xf32>
      %c0_18 = arith.constant 0 : index
      %c0_19 = arith.constant 0 : index
      %18 = vector.load %arg7[%c0_18, %c0_19] : memref<1x4xf32, #tpu.memory_space<vmem>>, vector<1x4xf32>
      tpu.vector_store %arg7[%c0_18, %c0_19], %17 {strides = array<i32>} : memref<1x4xf32, #tpu.memory_space<vmem>>, vector<1x4xf32>,
    } else {
    }
    %c0 = arith.constant 0 : index
    %c0_1 = arith.constant 0 : index
    %c0_2 = arith.constant 0 : index
    %3 = vector.load %arg2[%c0, %c0_1, %c0_2] : memref<1x4x256xf32, #tpu.memory_space<vmem>>, vector<1x4x256xf32>
    %c0_3 = arith.constant 0 : index
    %c0_4 = arith.constant 0 : index
    %4 = vector.load %arg6[%c0_3, %c0_4] : memref<1x4xf32, #tpu.memory_space<vmem>>, vector<1x4xf32>
    %cst = arith.constant dense<0.000000e+00> : vector<1x4xf32>
    %5 = vector.multi_reduction <add>, %3, %cst [2] : vector<1x4x256xf32> to vector<1x4xf32>
    %6 = arith.addf %4, %5 : vector<1x4xf32>
    %c0_5 = arith.constant 0 : index
    %c0_6 = arith.constant 0 : index
    %7 = vector.load %arg6[%c0_5, %c0_6] : memref<1x4xf32, #tpu.memory_space<vmem>>, vector<1x4xf32>
    tpu.vector_store %arg6[%c0_5, %c0_6], %6 {strides = array<i32>} : memref<1x4xf32, #tpu.memory_space<vmem>>, vector<1x4xf32>,
    %c0_7 = arith.constant 0 : index
    %c0_8 = arith.constant 0 : index
    %8 = vector.load %arg7[%c0_7, %c0_8] : memref<1x4xf32, #tpu.memory_space<vmem>>, vector<1x4xf32>
    %cst_9 = arith.constant dense<0xFF800000> : vector<1x4xf32>
    %9 = vector.multi_reduction <maximumf>, %3, %cst_9 [2] : vector<1x4x256xf32> to vector<1x4xf32>
    %10 = arith.maximumf %8, %9 : vector<1x4xf32>
    %c0_10 = arith.constant 0 : index
    %c0_11 = arith.constant 0 : index
    %11 = vector.load %arg7[%c0_10, %c0_11] : memref<1x4xf32, #tpu.memory_space<vmem>>, vector<1x4xf32>
    tpu.vector_store %arg7[%c0_10, %c0_11], %10 {strides = array<i32>} : memref<1x4xf32, #tpu.memory_space<vmem>>, vector<1x4xf32>,
    %c0_i32_12 = arith.constant 0 : i32
    %12 = arith.cmpi eq, %arg1, %c0_i32_12 : i32
    %13 = arith.extui %12 : i1 to i32
    %c0_i32_13 = arith.constant 0 : i32
    %14 = arith.cmpi ne, %13, %c0_i32_13 : i32
    scf.if %14 {
      %c0_14 = arith.constant 0 : index
      %c0_15 = arith.constant 0 : index
      %15 = vector.load %arg6[%c0_14, %c0_15] : memref<1x4xf32, #tpu.memory_space<vmem>>, vector<1x4xf32>
      %cst_16 = arith.constant 3.906250e-03 : f32
      %16 = vector.broadcast %cst_16 : f32 to vector<1x4xf32>
      %17 = arith.mulf %15, %16 : vector<1x4xf32>
      %c0_17 = arith.constant 0 : index
      %c0_18 = arith.constant 0 : index
      %18 = vector.load %arg7[%c0_17, %c0_18] : memref<1x4xf32, #tpu.memory_space<vmem>>, vector<1x4xf32>
      %c0_19 = arith.constant 0 : index
      %c0_20 = arith.constant 0 : index
      %19 = vector.load %arg3[%c0_19, %c0_20] : memref<4x4xf32, #tpu.memory_space<vmem>>, vector<4x4xf32>
      %c0_21 = arith.constant 0 : index
      %c0_22 = arith.constant 0 : index
      %20 = vector.load %arg4[%c0_21, %c0_22] : memref<4x4xf32, #tpu.memory_space<vmem>>, vector<4x4xf32>
      %cst_23 = arith.constant dense<0.000000e+00> : vector<1x4xf32>
      %21 = tpu.matmul %17, %19, %cst_23 {dimension_numbers = #tpu.dot_dimension_numbers<[1], [0], [0], [1], [0, 0, 1, 1], [], []>} : vector<1x4xf32>, vector<4x4xf32>, vector<1x4xf32> -> vector<1x4xf32>
      %cst_24 = arith.constant 0.000000e+00 : f32
      %22 = vector.broadcast %cst_24 : f32 to vector<1x4xf32>
      %23 = arith.maximumf %21, %22 : vector<1x4xf32>
      %cst_25 = arith.constant dense<0.000000e+00> : vector<1x4xf32>
      %24 = tpu.matmul %23, %20, %cst_25 {dimension_numbers = #tpu.dot_dimension_numbers<[1], [0], [0], [1], [0, 0, 1, 1], [], []>} : vector<1x4xf32>, vector<4x4xf32>, vector<1x4xf32> -> vector<1x4xf32>
      %cst_26 = arith.constant dense<0.000000e+00> : vector<1x4xf32>
      %25 = tpu.matmul %18, %19, %cst_26 {dimension_numbers = #tpu.dot_dimension_numbers<[1], [0], [0], [1], [0, 0, 1, 1], [], []>} : vector<1x4xf32>, vector<4x4xf32>, vector<1x4xf32> -> vector<1x4xf32>
      %cst_27 = arith.constant 0.000000e+00 : f32
      %26 = vector.broadcast %cst_27 : f32 to vector<1x4xf32>
      %27 = arith.maximumf %25, %26 : vector<1x4xf32>
      %cst_28 = arith.constant dense<0.000000e+00> : vector<1x4xf32>
      %28 = tpu.matmul %27, %20, %cst_28 {dimension_numbers = #tpu.dot_dimension_numbers<[1], [0], [0], [1], [0, 0, 1, 1], [], []>} : vector<1x4xf32>, vector<4x4xf32>, vector<1x4xf32> -> vector<1x4xf32>
      %29 = arith.addf %24, %28 : vector<1x4xf32>
      %30 = arith.negf %29 : vector<1x4xf32>
      %31 = math.exp %30 : vector<1x4xf32>
      %cst_29 = arith.constant 1.000000e+00 : f32
      %32 = vector.broadcast %cst_29 : f32 to vector<1x4xf32>
      %33 = arith.addf %32, %31 : vector<1x4xf32>
      %34 = arith.divf %32, %33 : vector<1x4xf32>
      %35 = vector.shape_cast %34 : vector<1x4xf32> to vector<1x1x4xf32>
      %c0_30 = arith.constant 0 : index
      %c0_31 = arith.constant 0 : index
      %c0_32 = arith.constant 0 : index
      %36 = vector.load %arg5[%c0_30, %c0_31, %c0_32] : memref<1x1x4xf32, #tpu.memory_space<vmem>>, vector<1x1x4xf32>
      tpu.vector_store %arg5[%c0_30, %c0_31, %c0_32], %35 {strides = array<i32>} : memref<1x1x4xf32, #tpu.memory_space<vmem>>, vector<1x1x4xf32>,
    } else {
    }
    return
  }
  func.func @transform_0(%arg0: i32, %arg1: i32) -> (i32, i32, i32) {
    %c0_i32 = arith.constant 0 : i32
    %c0_i32_0 = arith.constant 0 : i32
    return %arg0, %c0_i32, %arg1 : i32, i32, i32
  }
  func.func @transform_1(%arg0: i32, %arg1: i32) -> (i32, i32) {
    %c0_i32 = arith.constant 0 : i32
    %c0_i32_0 = arith.constant 0 : i32
    %c0_i32_1 = arith.constant 0 : i32
    return %c0_i32, %c0_i32_0 : i32, i32
  }
  func.func @transform_2(%arg0: i32, %arg1: i32) -> (i32, i32) {
    %c0_i32 = arith.constant 0 : i32
    %c0_i32_0 = arith.constant 0 : i32
    %c0_i32_1 = arith.constant 0 : i32
    return %c0_i32, %c0_i32_0 : i32, i32
  }
  func.func @transform_3(%arg0: i32, %arg1: i32) -> (i32, i32, i32) {
    %c0_i32 = arith.constant 0 : i32
    %c0_i32_0 = arith.constant 0 : i32
    %c0_i32_1 = arith.constant 0 : i32
    return %arg0, %c0_i32, %c0_i32_0 : i32, i32, i32
  }
}

</mosaic_0001>

<bundles_post_ra>
// kernel: tpu_custom_call.1
= control target key start
LH: loop header
LB: loop body
LE: loop exit
PB: predicated region body
PF: predicated region fallthrough
CT: control target
= control target key end

     0   :  { %8 = vsyncpa [#allocation5], 0  ;;  %s1027_s0 = inlined_call_operand.hbm [shape: f32[2,4,256], index: 0, kind: input, shape index: {}]   ;;  %s1028_s1 = inlined_call_operand.hbm [shape: f32[4,4], index: 1, kind: input, shape index: {}]   ;;  %s1029_s2 = inlined_call_operand.hbm [shape: f32[4,4], index: 2, kind: input, shape index: {}]   ;;  %s1030_s3 = inlined_call_operand.hbm [shape: f32[2,1,4], index: 3, kind: output, shape index: {}]  }
   0x1   :  { %10 = vsyncpa [#allocation5 + $0x1], 0 }
   0x2   :  { %11 = vsyncpa [#allocation8], 0 }
   0x3   :  { %12 = vsyncpa [#allocation6], 0 }
   0x4   :  { %14 = vsyncpa [#allocation6 + $0x1], 0  ;;  %s867_s12 = smov 0   ;;  %s869_s13 = smov 0  }
   0x5   :  { %s871_s14 = smov 0   ;;  %s873_s15 = smov 0  }
   0x6   :  { %s875_s16 = smov 0   ;;  %s877_s17 = smov 0  }
   0x7 LB: > { %s547_s18 = sadd.s32 4294967295, %s840_s17   ;;  %s548_s19 = sadd.s32 4294967294, %s840_s17   ;;  %s840_s17 = sphi %s877_s17, %s20_s17   ;;  %s836_s16 = sphi %s875_s16, %s1040_s16   ;;  %s832_s15 = sphi %s873_s15, %s1039_s15   ;;  %s828_s14 = sphi %s871_s14, %s1038_s14   ;;  %s824_s13 = sphi %s869_s13, %s1037_s13   ;;  %s820_s12 = sphi %s867_s12, %s1036_s12  }
   0x8   : > { %p54_p0 = scmp.ne.s32.totalorder %s824_s13, %s820_s12  ;;  %p901_p1 = scmp.eq.s32.totalorder %s547_s18, 0 }
   0x9   : > { %p126_p2 = scmp.eq.s32.totalorder %s548_s19, 1  ;;  %p549_p4 = scmp.ge.s32.totalorder %s840_s17, 1 }
   0xa   : > { %p907_p3 = por %p901_p1, %p54_p0  ;;  %p133_p6 = scmp.lt.s32.totalorder %s840_s17, 3 }
   0xb   : > { %p912_p5 = por %p126_p2, %p54_p0  ;;  %s145_s25 = sshll.u32 %s1028_s1, 4  ;;  %s146_s25 = int_to_ptr.hbm [resolvable:$true] %s145_s25 }
   0xc   : > { %p920_p7 = pnand %p549_p4, %p133_p6  ;;  %p552_p8 = scmp.ge.s32.totalorder %s840_s17, 2 }
   0xd   : > { %s842_s27 = smov [#allocation7]   ;;  %s157_s4 = sshll.u32 %s1029_s2, 4  ;;  %s158_s4 = int_to_ptr.hbm [resolvable:$true] %s157_s4 }
   0xe   : > { %p584_p9 = pneg %p920_p7  ;;  %s147_s28 = sshll.u32 %s842_s27, 4  ;;  %s148_s28 = int_to_ptr.vmem [resolvable:$true] %s147_s28 }
   0xf   : > { %s843_s5 = smov [#allocation9]   ;;  %p120_p11 = scmp.eq.s32.totalorder %s547_s18, 1 }
  0x10   : > { %p585_p10 = pnand %p584_p9, %p901_p1  ;;  %s159_s6 = sshll.u32 %s843_s5, 4  ;;  %s160_s6 = int_to_ptr.vmem [resolvable:$true] %s159_s6 }
  0x11   : > { %s32_s7 = sadd.s32 1, %s836_s16  ;;  %s41_s8 = sadd.s32 1, %s828_s14 }
  0x12   : > { %587 = dma.hbm_to_vmem [thread:$0]  (!%p585_p10), %s146_s25, 64, %s148_s28, [#allocation8]  }
  0x13   : > { %590 = dma.hbm_to_vmem [thread:$0]  (!%p585_p10), %s158_s4, 64, %s160_s6, [#allocation8]  }
  0x14   : > { %p34_p12 = scmp.ge.s32.totalorder %s32_s7, 2  ;;  %p48_p13 = scmp.ne.s32.totalorder %s828_s14, %s824_s13 }
  0x15   : > { %p49_p0 = scmp.eq.s32.totalorder %s840_s17, 0  ;;  %p601_p4 = scmp.lt.s32.totalorder %s840_s17, 2 }
  0x16   : > { %s1042_s7 = smov (%p34_p12, %s32_s7), 0  ;;  %p939_p2 = por %p120_p11, %p48_p13 }
  0x17   : > { %s36_s10 = ssub.s32 %s836_s16, %s1042_s7  ;;  %s170_s11 = sand.u32 1, %s828_s14  }
  0x18   : > { %p39_p6 = scmp.eq.s32.totalorder %s36_s10, 0  ;;  %p50_p9 = por %p49_p0, %p48_p13 }
  0x19   : > { %s553_s19 = sshll.u32 %s170_s11, 3  ;;  %s571_s18 = sshll.u32 %s836_s16, 3 }
  0x1a   : > { %s949_s23 = scalar_select %p39_p6, %s828_s14, %s41_s8  }
  0x1b   : > { %s181_s27 = scalar_lea.hbm %s1027_s0, %s571_s18  ;;  %s174_s29 = scalar_lea.vmem [#allocation4], %s553_s19 }
  0x1c   : > { %s183_s28 = sshll.u32 %s181_s27, 4  ;;  %s185_s30 = sshll.u32 %s174_s29, 4  ;;  %s184_s28 = int_to_ptr.hbm [resolvable:$true] %s183_s28  ;;  %s186_s30 = int_to_ptr.vmem [resolvable:$true] %s185_s30 }
  0x1d   : > { %p592_p10 = pnand %p601_p4, %p50_p9  ;;  %s171_s4 = scalar_lea.sflag [#allocation5], %s170_s11 }
  0x1e   : > { %194 = sbr.rel (%p920_p7) target bundleno = 739 (0x2e3), region = 32  ;;  %s959_s5 = sand.u32 (!%p920_p7), 1, %s824_s13  }
  0x1f   : > { %594 = dma.hbm_to_vmem [thread:$0]  (!%p592_p10), %s184_s28, 128, %s186_s30, %s171_s4  }
  0x20   : > { %s557_s6 = sshll.u32 (!%p920_p7), %s959_s5, 3  ;;  %s197_s8 = scalar_lea.sflag (!%p920_p7), [#allocation5], %s959_s5 }
  0x21   : > { %s200_s10 = scalar_lea.vmem (!%p920_p7), [#allocation4], %s557_s6 }
  0x23   : > { %807 = dma.done.wait (%p907_p3), %s197_s8, 128  }
  0x24   : > { %809 = vsyncadd (%p907_p3), %s197_s8, 4294967168 }
  0x25   : > { %811 = dma.done.wait (%p901_p1), [#allocation8], 128  }
  0x26   : > { %813 = vsyncadd (%p901_p1), [#allocation8], 4294967168  ;;  %v241_v0 = vld [vmem:[%s200_s10] sm:$0xff]  ;;  %vm249_vm0 = vcmask 1043456   ;;  %v844_v6 = vmov 0   ;;  %vm238_vm1 = vcmask 24576   ;;  %v271_v20 = vlaneseq  ;;  %s447_s26 = scalar_lea.hbm %s1030_s3, %s832_s15 }
  0x27   : > { %244 = vst [vmem:[#allocation1] ss:$2 sm:$0xff] %v241_v0  ;;  %658 = vset.pattern.permute.xlu1 %v844_v6  ;;  %659 = vset.pattern.permute.xlu0 %v844_v6  ;;  %v845_v7 = vmov 0.0   ;;  %v315_v19 = vld [vmem:[#allocation7] sm:$0xf]  ;;  %v846_v21 = vmov -inf  }
  0x28   : > { %239 = vst.msk [vmem:[#allocation2] sm:$0x1] %vm238_vm1, %v845_v7  ;;  %560 = vmatpush.msk.msra.mxu0 %vm249_vm0, %v315_v19  ;;  %562 = vmatpush.msk.msra.mxu1 %vm249_vm0, %v315_v19  ;;  %v272_v22 = vand.u32 127, %v271_v20  ;;  %vm317_vm2 = vcmask 31744   ;;  %v316_v35 = vld [vmem:[#allocation9] sm:$0xf] }
  0x29   : > { %240 = vst.msk [vmem:[#allocation3] sm:$0x1] %vm238_vm1, %v846_v21  ;;  %566 = vmatpush.msk.msra.mxu3 %vm249_vm0, %v316_v35  ;;  %564 = vmatpush.msk.msra.mxu2 %vm249_vm0, %v316_v35  ;;  %s232_s11 = scalar_lea.vmem [#allocation10], %s959_s5  ;;  %s451_s18 = sshll.u32 %s447_s26, 4  ;;  %s452_s18 = int_to_ptr.hbm [resolvable:$true] %s451_s18 }
  0x2a   : > { %s449_s19 = sshll.u32 %s232_s11, 4  ;;  %s439_s15 = scalar_lea.sflag [#allocation6], %s959_s5  ;;  %s450_s19 = int_to_ptr.vmem [resolvable:$true] %s449_s19 }
  0x2b   : > { %s768_s24 = sshra.s32 %s452_s18, 4  ;;  %s774_s29 = scalar_lea.hbm %s1030_s3, 2  ;;  %s769_s24 = int_to_ptr.hbm [resolvable:$true] %s768_s24 }
  0x2c   : > { %s770_s25 = scalar_lea.hbm %s769_s24, 1  ;;  %p775_p11 = scmp.lt.s32.totalorder %s769_s24, %s1030_s3 }
  0x2d   : > { %p771_p1 = scmp.ne.s32.totalorder %s769_s24, %s770_s25  ;;  %p776_p12 = scmp.lt.s32.totalorder %s774_s29, %s770_s25 }
  0x2e   : > { %v245_v1 = vld.sshfl [vmem:[#allocation1] sm:$0xff pattern:$0x75316420]  ;;  %v246_v2 = vld.sshfl [vmem:[#allocation1 + $0x8] sm:$0xff pattern:$0x75316420] }
  0x2f   : > { %v250_v3 = vsel %vm249_vm0, %v245_v1, 0.0  ;;  %v251_v4 = vsel %vm249_vm0, %v246_v2, 0.0  ;;  %v242_v24 = vld [vmem:[#allocation2] sm:$0x1]  ;;  %p772_p3 = pnand %p771_p1, %p939_p2  ;;  %p777_p13 = por %p776_p12, %p775_p11 }
  0x30   : > { %v252_v5 = vadd.f32 %v251_v4, %v250_v3  ;;  %v278_v37 = vld [vmem:[#allocation3] sm:$0x1] }
  0x31   : > { %p773_p7 = pneg %p772_p3 }
  0x32   : > { %253 = vadd.xlane.f32.xlu0 %v252_v5 }
  0x33   : > { %p778_p0 = pnand %p777_p13, %p773_p7 }
  0xa5   : > { %v254_v8 = vpop.xlane.xlu0 %253 }
  0xa6   : > { %v256_v9 = vperm.slane %v254_v8, 0  ;;  %v257_v10 = vperm.slane %v254_v8, 1  ;;  %v258_v11 = vperm.slane %v254_v8, 2  ;;  %v259_v12 = vperm.slane %v254_v8, 3 }
  0xa8   : > { %260 = vst [vmem:[#allocation1] ss:$9 sm:$0xff] %v256_v9 }
  0xa9   : > { %262 = vst [vmem:[#allocation1 + $0x1] ss:$9 sm:$0xff] %v257_v10 }
  0xaa   : > { %264 = vst [vmem:[#allocation1 + $0x2] ss:$9 sm:$0xff] %v258_v11 }
  0xab   : > { %266 = vst [vmem:[#allocation1 + $0x3] ss:$9 sm:$0xff] %v259_v12 }
  0xb2   : > { %v267_v13 = vld [vmem:[#allocation1] sm:$0xff] }
  0xb3   : > { %269 = vperm.xlu1 %658, %v267_v13   ;;  %279 = vst [vmem:[#allocation1] ss:$2 sm:$0xff] %v241_v0 }
  0xba   : > { %v280_v14 = vld.sshfl [vmem:[#allocation1] sm:$0xff pattern:$0x75316420]  ;;  %v281_v15 = vld.sshfl [vmem:[#allocation1 + $0x8] sm:$0xff pattern:$0x75316420] }
  0xbb   : > { %v284_v16 = vsel %vm249_vm0, %v280_v14, -inf  ;;  %v285_v17 = vsel %vm249_vm0, %v281_v15, -inf }
  0xbc   : > { %v286_v18 = vmax.f32 %v284_v16, %v285_v17 }
  0xbe   : > { %287 = vmax.xlane.f32.xlu0 %v286_v18 }
 0x125   : > { %v270_v23 = vpop.permute.xlu1 %269 }
 0x126   : > { %v273_v25 = vperm.slane %v270_v23, %v272_v22 }
 0x128   : > { %v275_v26 = vadd.f32 %v273_v25, %v242_v24 }
 0x12a   : > { %277 = vst.msk [vmem:[#allocation2] sm:$0x1] %vm238_vm1, %v275_v26 }
 0x131   : > { %v288_v27 = vpop.xlane.xlu0 %287  ;;  %v312_v28 = vld [vmem:[#allocation2] sm:$0x1] }
 0x132   : > { %v290_v29 = vperm.slane %v288_v27, 0  ;;  %v291_v30 = vperm.slane %v288_v27, 1  ;;  %v292_v31 = vperm.slane %v288_v27, 2  ;;  %v293_v32 = vperm.slane %v288_v27, 3 }
 0x133   : > { %v313_v33 = vmul.f32 0.00390625, %v312_v28 }
 0x134   : > { %294 = vst [vmem:[#allocation1] ss:$9 sm:$0xff] %v290_v29 }
 0x135   : > { %296 = vst [vmem:[#allocation1 + $0x1] ss:$9 sm:$0xff] %v291_v30  ;;  %561 = vmatmul.msk.f32.vlgmr.msra.gmra.mxu0 %vm317_vm2, %v313_v33 }
 0x136   : > { %298 = vst [vmem:[#allocation1 + $0x2] ss:$9 sm:$0xff] %v292_v31 }
 0x137   : > { %300 = vst [vmem:[#allocation1 + $0x3] ss:$9 sm:$0xff] %v293_v32 }
 0x13e   : > { %v301_v34 = vld [vmem:[#allocation1] sm:$0xff] }
 0x13f   : > { %303 = vperm.xlu1 %658, %v301_v34  }
 0x1b1   : > { %v304_v36 = vpop.permute.xlu1 %303 }
 0x1b2   : > { %v305_v38 = vperm.slane %v304_v36, %v272_v22  ;;  %v341_v39 = vpop.f32.mrf.mxu0 }
 0x1b3   : > { %v344_v40 = vmax.f32 %v341_v39, 0.0 }
 0x1b4   : > { %v307_v41 = vmax.f32 %v278_v37, %v305_v38 }
 0x1b5   : > { %567 = vmatmul.msk.f32.vlgmr.msra.gmra.mxu3 %vm317_vm2, %v344_v40 }
 0x1b6   : > { %308 = vst.msk [vmem:[#allocation3] sm:$0x1] %vm238_vm1, %v307_v41 }
 0x1bd   : > { %v314_v42 = vld [vmem:[#allocation3] sm:$0x1] }
 0x1be   : > { %563 = vmatmul.msk.f32.vlgmr.msra.gmra.mxu1 %vm317_vm2, %v314_v42 }
 0x238   : > { %v415_v45 = vpop.f32.mrf.mxu3 }
 0x23b   : > { %v365_v43 = vpop.f32.mrf.mxu1 }
 0x23c   : > { %v368_v44 = vmax.f32 %v365_v43, 0.0 }
 0x23e   : > { %565 = vmatmul.msk.f32.vlgmr.msra.gmra.mxu2 %vm317_vm2, %v368_v44 }
 0x2c1   : > { %v392_v46 = vpop.f32.mrf.mxu2 }
 0x2c2   : > { %v416_v47 = vadd.f32 %v415_v45, %v392_v46 }
 0x2c4   : > { %v568_v48 = vmul.f32 -1.442695, %v416_v47 }
 0x2c6   : > { %660 = vpow2.f32 %v568_v48 }
 0x2cc   : > { %v661_v49 = vpop.eup %660 }
 0x2cd   : > { %v421_v50 = vadd.f32 1.0, %v661_v49 }
 0x2cf   : > { %662 = vrcp.f32 %v421_v50  ;;  %v433_v54 = vand.u32 2147483648, %v421_v50  ;;  %v431_v56 = vand.u32 2147483647, %v421_v50  ;;  %vm427_vm4 = vweird.f32 %v421_v50 }
 0x2d1   : > { %v434_v58 = vor.u32 1.1754944e-38, %v433_v54  ;;  %vm432_vm6 = vcmp.eq.f32.partialorder %v431_v56, 8.507059e+37 }
 0x2d5   : > { %v663_v51 = vpop.eup %662 }
 0x2d6   : > { %v423_v52 = vmul.f32 %v663_v51, %v421_v50  ;;  %vm428_vm3 = vweird.f32 %v663_v51 }
 0x2d7   : > { %vm429_vm5 = vmor %vm427_vm4, %vm428_vm3 }
 0x2d8   : > { %v424_v53 = vsub.f32 1.0, %v423_v52 }
 0x2da   : > { %v425_v55 = vmul.f32 %v663_v51, %v424_v53 }
 0x2dc   : > { %v426_v57 = vadd.f32 %v663_v51, %v425_v55 }
 0x2de   : > { %v430_v59 = vsel %vm429_vm5, %v663_v51, %v426_v57 }
 0x2df   : > { %v435_v60 = vsel %vm432_vm6, %v434_v58, %v430_v59 }
 0x2e0   : > { %437 = vst.msk [vmem:[%s232_s11] sm:$0x1] %vm238_vm1, %v435_v60 }
 0x2e1   : > { %781 = shalt.err (!%p778_p0)
}
 0x2e2   : > { %582 = dma.vmem_to_hbm [thread:$0]  (%p939_p2), %s450_s19, 16, %s452_s18, %s439_s15  }
 0x2e3 PF: > { %s463_s5 = sand.u32 1, %s820_s12   ;;  %p596_p4 = pnand %p552_p8, %p912_p5 }
 0x2e4   : > { %s464_s6 = scalar_lea.sflag [#allocation6], %s463_s5 }
 0x2e5   : > { %p597_p6 = pneg %p596_p4 }
 0x2e7   : > { %815 = dma.done.wait (%p597_p6), %s464_s6, 16  }
 0x2e8   : > { %817 = vsyncadd (%p597_p6), %s464_s6, 4294967280  ;;  %s20_s17 = sadd.s32 1, %s840_s17   ;;  %s1036_s12 = smov %s824_s13 }
 0x2e9   : > { %p17_p9 = scmp.ge.s32.totalorder %s20_s17, 4   ;;  %s1037_s13 = smov %s828_s14 }
 0x2ea   : > { %s1038_s14 = smov %s949_s23  ;;  %s1039_s15 = smov %s836_s16 }
 0x2eb   : > { %s1040_s16 = smov %s1042_s7  ;;  %19 = sbr.rel (!%p17_p9) target bundleno = 7 (0x7), region = 99 }
 0x2f0   :  { %469 = vsyncpa [#allocation5], 1 }
 0x2f1   :  { %471 = vsyncpa [#allocation5 + $0x1], 1 }
 0x2f2   :  { %472 = vsyncpa [#allocation8], 1 }
 0x2f3   :  { %473 = vsyncpa [#allocation6], 1 }
 0x2f4   :  { %475 = vsyncpa [#allocation6 + $0x1], 1 }

</bundles_post_ra>
